<compile_context>
chip_gen: v5e
topology: v5e:2x2
jax: 0.10.0
libtpu: 0.0.40
codegen_flags: <defaults>
</compile_context>

<pallas_src>
import math

import jax
import jax.numpy as jnp
from jax.experimental import pallas as pl
from jax.experimental.pallas import tpu as pltpu


SCALING = 0.9
QUANTIZATION = 256.0

# Fused affine:  ((2*((x*(Q-1)+u)/Q) - 1)*s + 1)/2  ==  x*_A + u*_B + _C
_A = SCALING * (QUANTIZATION - 1.0) / QUANTIZATION
_B = SCALING / QUANTIZATION
_C = (1.0 - SCALING) / 2.0
_LOG_S = math.log(SCALING)


def _logit_preprocess_kernel(x_ref, u_ref, mapped_ref, logdet_ref):
    k = pl.program_id(1)  # feature (reduction) axis, innermost

    @pl.when(k == 0)
    def _():
        logdet_ref[...] = jnp.zeros_like(logdet_ref)

    x = x_ref[...].astype(jnp.float32)
    u = u_ref[...].astype(jnp.float32)

    # Dequantize + shrink folded into a single affine pass (VPU).
    z = x * _A + u * _B + _C

    log_z = jnp.log(z)        # EUP
    log_1mz = jnp.log(1.0 - z)

    mapped_ref[...] = (log_z - log_1mz).astype(mapped_ref.dtype)

    # per-element log|det J| = -log(z) - log(1-z) + log(scaling); the constant
    # log(scaling) term is folded in via the (static) block element count.
    partial = -(jnp.sum(log_z) + jnp.sum(log_1mz)) + float(log_z.size) * _LOG_S
    logdet_ref[...] = logdet_ref[...] + partial


def logit_preprocess(x, seed=0, *, max_block_rows=2048):
    """x: (N, C, H, W) float array. Returns (mapped_x (N,C,H,W), log_det (N,))."""
    n, c, h, w = x.shape
    d = c * h * w
    x_flat = x.reshape(n, d).astype(jnp.float32)

    # Uniform jitter in [0, 1).  Generated with jax.random in the wrapper so the
    # kernel has no TPU-only PRNG primitives (pltpu.prng_* has no CPU/interpret
    # lowering).
    # TODO(synk): on real TPU, in-kernel pltpu.prng_random_bits would save one
    # HBM input stream.
    u_flat = jax.random.uniform(jax.random.PRNGKey(seed), (n, d), dtype=jnp.float32)

    # Pad the feature dim to a multiple of 128 with x = u = 0.5.  Padded
    # elements land exactly on z == 0.5, so their mapped value is 0 (sliced
    # away) and their log_det contribution is the known constant
    # 2*log(2) + log(scaling), removed analytically below.
    d_pad = pl.cdiv(d, 128) * 128
    pad = d_pad - d
    if pad:
        x_flat = jnp.pad(x_flat, ((0, 0), (0, pad)), constant_values=0.5)
        u_flat = jnp.pad(u_flat, ((0, 0), (0, pad)), constant_values=0.5)

    rows = d_pad // 128
    # Largest sublane-aligned (multiple-of-8) tile dividing `rows`, capped at
    # ~1 MiB/block (2048*128*4B) so in+in+out double-buffering stays well under
    # the v7x 32 MiB default scoped-VMEM budget; else fall back to full extent.
    s = rows
    for cand in range(min(rows, max_block_rows), 7, -1):
        if cand % 8 == 0 and rows % cand == 0:
            s = cand
            break
    kt = rows // s

    x3 = x_flat.reshape(n, rows, 128)
    u3 = u_flat.reshape(n, rows, 128)

    cost = pl.CostEstimate(
        flops=6 * n * d_pad,
        transcendentals=2 * n * d_pad,
        bytes_accessed=3 * 4 * n * d_pad + 4 * n,
    )

    mapped3, logdet = pl.pallas_call(
        _logit_preprocess_kernel,
        out_shape=(
            jax.ShapeDtypeStruct((n, rows, 128), x.dtype),
            jax.ShapeDtypeStruct((n, 1, 1), jnp.float32),
        ),
        grid_spec=pltpu.PrefetchScalarGridSpec(
            num_scalar_prefetch=0,
            grid=(n, kt),
            in_specs=[
                pl.BlockSpec((1, s, 128), lambda b, k: (b, k, 0)),
                pl.BlockSpec((1, s, 128), lambda b, k: (b, k, 0)),
            ],
            out_specs=[
                pl.BlockSpec((1, s, 128), lambda b, k: (b, k, 0)),
                pl.BlockSpec((1, 1, 1), lambda b, k: (b, 0, 0)),
            ],
        ),
        compiler_params=pltpu.CompilerParams(
            dimension_semantics=("parallel", "arbitrary"),
        ),
        cost_estimate=cost,
    )(x3, u3)

    mapped = mapped3.reshape(n, d_pad)[:, :d].reshape(n, c, h, w)
    log_det = logdet.reshape(n)
    if pad:
        log_det = log_det - pad * (2.0 * math.log(2.0) + _LOG_S)
    return mapped, log_det


if __name__ == "__main__":
    key = jax.random.PRNGKey(0)
    # Small NCHW input in [0, 1], consistent with a quantized-image use case.
    x = jax.random.uniform(key, (2, 4, 16, 16), dtype=jnp.float32)

    mapped, log_det = logit_preprocess(x, seed=0)
    mapped = jax.block_until_ready(mapped)
    log_det = jax.block_until_ready(log_det)

    assert mapped.shape == x.shape
    assert log_det.shape == (x.shape[0],)
    assert bool(jnp.all(jnp.isfinite(mapped)))
    assert bool(jnp.all(jnp.isfinite(log_det)))

    # Pure-JAX reference using the same jitter (same PRNGKey, same shape).
    n, c, h, w = x.shape
    d = c * h * w
    u = jax.random.uniform(jax.random.PRNGKey(0), (n, d), dtype=jnp.float32)
    xf = x.reshape(n, d)
    x1 = (xf * (QUANTIZATION - 1.0) + u) / QUANTIZATION
    x2 = ((2.0 * x1 - 1.0) * SCALING + 1.0) / 2.0
    mapped_ref = (jnp.log(x2) - jnp.log(1.0 - x2)).reshape(x.shape)
    ld_ref = jnp.sum(-jnp.log(x2) - jnp.log(1.0 - x2) + math.log(SCALING), axis=-1)

    assert bool(jnp.allclose(mapped, mapped_ref, rtol=1e-4, atol=1e-4))
    assert bool(jnp.allclose(log_det, ld_ref, rtol=1e-4, atol=1e-2))

    print("KERNEL_OK")
</pallas_src>

<mosaic_0001>
module attributes {stable_mosaic.version = 11 : i64} {
  func.func @_logit_preprocess_kernel(%arg0: i32, %arg1: i32, %arg2: memref<1x8x128xf32, #tpu.memory_space<vmem>>, %arg3: memref<1x8x128xf32, #tpu.memory_space<vmem>>, %arg4: memref<1x8x128xf32, #tpu.memory_space<vmem>>, %arg5: memref<1x1x1xf32, #tpu.memory_space<vmem>>) attributes {dimension_semantics = [#tpu.dimension_semantics<parallel>, #tpu.dimension_semantics<arbitrary>], iteration_bounds = array<i64: 2, 1>, scalar_prefetch = 0 : i64, scratch_operands = 0 : i64, tpu.core_type = #tpu.core_type<tc>, window_params = [{transform_indices = @transform_0, window_bounds = array<i64: 1, 8, 128>}, {transform_indices = @transform_1, window_bounds = array<i64: 1, 8, 128>}, {transform_indices = @transform_2, window_bounds = array<i64: 1, 8, 128>}, {transform_indices = @transform_3, window_bounds = array<i64: 1, 1, 1>}]} {
    %c0_i32 = arith.constant 0 : i32
    %0 = arith.cmpi eq, %arg1, %c0_i32 : i32
    %1 = arith.extui %0 : i1 to i32
    %c0_i32_0 = arith.constant 0 : i32
    %2 = arith.cmpi ne, %1, %c0_i32_0 : i32
    scf.if %2 {
      %cst_22 = arith.constant 0.000000e+00 : f32
      %33 = vector.broadcast %cst_22 : f32 to vector<1x1x1xf32>
      %c0_23 = arith.constant 0 : index
      %c0_24 = arith.constant 0 : index
      %c0_25 = arith.constant 0 : index
      %34 = vector.load %arg5[%c0_23, %c0_24, %c0_25] : memref<1x1x1xf32, #tpu.memory_space<vmem>>, vector<1x1x1xf32>
      tpu.vector_store %arg5[%c0_23, %c0_24, %c0_25], %33 {strides = array<i32>} : memref<1x1x1xf32, #tpu.memory_space<vmem>>, vector<1x1x1xf32>,
    } else {
    }
    %c0 = arith.constant 0 : index
    %c0_1 = arith.constant 0 : index
    %c0_2 = arith.constant 0 : index
    %3 = vector.load %arg2[%c0, %c0_1, %c0_2] : memref<1x8x128xf32, #tpu.memory_space<vmem>>, vector<1x8x128xf32>
    %c0_3 = arith.constant 0 : index
    %c0_4 = arith.constant 0 : index
    %c0_5 = arith.constant 0 : index
    %4 = vector.load %arg3[%c0_3, %c0_4, %c0_5] : memref<1x8x128xf32, #tpu.memory_space<vmem>>, vector<1x8x128xf32>
    %cst = arith.constant 0.896484375 : f32
    %5 = vector.broadcast %cst : f32 to vector<1x8x128xf32>
    %6 = arith.mulf %3, %5 : vector<1x8x128xf32>
    %cst_6 = arith.constant 0.00351562491 : f32
    %7 = vector.broadcast %cst_6 : f32 to vector<1x8x128xf32>
    %8 = arith.mulf %4, %7 : vector<1x8x128xf32>
    %9 = arith.addf %6, %8 : vector<1x8x128xf32>
    %cst_7 = arith.constant 5.000000e-02 : f32
    %10 = vector.broadcast %cst_7 : f32 to vector<1x8x128xf32>
    %11 = arith.addf %9, %10 : vector<1x8x128xf32>
    %12 = math.log %11 : vector<1x8x128xf32>
    %cst_8 = arith.constant 1.000000e+00 : f32
    %13 = vector.broadcast %cst_8 : f32 to vector<1x8x128xf32>
    %14 = arith.subf %13, %11 : vector<1x8x128xf32>
    %15 = math.log %14 : vector<1x8x128xf32>
    %16 = arith.subf %12, %15 : vector<1x8x128xf32>
    %c0_9 = arith.constant 0 : index
    %c0_10 = arith.constant 0 : index
    %c0_11 = arith.constant 0 : index
    %17 = vector.load %arg4[%c0_9, %c0_10, %c0_11] : memref<1x8x128xf32, #tpu.memory_space<vmem>>, vector<1x8x128xf32>
    tpu.vector_store %arg4[%c0_9, %c0_10, %c0_11], %16 {strides = array<i32>} : memref<1x8x128xf32, #tpu.memory_space<vmem>>, vector<1x8x128xf32>,
    %18 = vector.shape_cast %12 : vector<1x8x128xf32> to vector<1x1x8x128xf32>
    %cst_12 = arith.constant dense<0.000000e+00> : vector<1xf32>
    %19 = vector.multi_reduction <add>, %18, %cst_12 [1, 2, 3] : vector<1x1x8x128xf32> to vector<1xf32>
    %20 = vector.shape_cast %19 : vector<1xf32> to vector<1x1x1x1xf32>
    %21 = vector.extract %20[0, 0, 0, 0] : f32 from vector<1x1x1x1xf32>
    %22 = vector.shape_cast %15 : vector<1x8x128xf32> to vector<1x1x8x128xf32>
    %cst_13 = arith.constant dense<0.000000e+00> : vector<1xf32>
    %23 = vector.multi_reduction <add>, %22, %cst_13 [1, 2, 3] : vector<1x1x8x128xf32> to vector<1xf32>
    %24 = vector.shape_cast %23 : vector<1xf32> to vector<1x1x1x1xf32>
    %25 = vector.extract %24[0, 0, 0, 0] : f32 from vector<1x1x1x1xf32>
    %26 = arith.addf %21, %25 : f32
    %cst_14 = arith.constant 0.000000e+00 : f32
    %27 = arith.subf %cst_14, %26 : f32
    %cst_15 = arith.constant -107.889168 : f32
    %28 = arith.addf %27, %cst_15 : f32
    %c0_16 = arith.constant 0 : index
    %c0_17 = arith.constant 0 : index
    %c0_18 = arith.constant 0 : index
    %29 = vector.load %arg5[%c0_16, %c0_17, %c0_18] : memref<1x1x1xf32, #tpu.memory_space<vmem>>, vector<1x1x1xf32>
    %30 = vector.broadcast %28 : f32 to vector<1x1x1xf32>
    %31 = arith.addf %29, %30 : vector<1x1x1xf32>
    %c0_19 = arith.constant 0 : index
    %c0_20 = arith.constant 0 : index
    %c0_21 = arith.constant 0 : index
    %32 = vector.load %arg5[%c0_19, %c0_20, %c0_21] : memref<1x1x1xf32, #tpu.memory_space<vmem>>, vector<1x1x1xf32>
    tpu.vector_store %arg5[%c0_19, %c0_20, %c0_21], %31 {strides = array<i32>} : memref<1x1x1xf32, #tpu.memory_space<vmem>>, vector<1x1x1xf32>,
    return
  }
  func.func @transform_0(%arg0: i32, %arg1: i32) -> (i32, i32, i32) {
    %c0_i32 = arith.constant 0 : i32
    %c0_i32_0 = arith.constant 0 : i32
    return %arg0, %arg1, %c0_i32 : i32, i32, i32
  }
  func.func @transform_1(%arg0: i32, %arg1: i32) -> (i32, i32, i32) {
    %c0_i32 = arith.constant 0 : i32
    %c0_i32_0 = arith.constant 0 : i32
    return %arg0, %arg1, %c0_i32 : i32, i32, i32
  }
  func.func @transform_2(%arg0: i32, %arg1: i32) -> (i32, i32, i32) {
    %c0_i32 = arith.constant 0 : i32
    %c0_i32_0 = arith.constant 0 : i32
    return %arg0, %arg1, %c0_i32 : i32, i32, i32
  }
  func.func @transform_3(%arg0: i32, %arg1: i32) -> (i32, i32, i32) {
    %c0_i32 = arith.constant 0 : i32
    %c0_i32_0 = arith.constant 0 : i32
    %c0_i32_1 = arith.constant 0 : i32
    return %arg0, %c0_i32, %c0_i32_0 : i32, i32, i32
  }
}

</mosaic_0001>

<bundles_post_ra>
// kernel: tpu_custom_call.1
= control target key start
LH: loop header
LB: loop body
LE: loop exit
PB: predicated region body
PF: predicated region fallthrough
CT: control target
= control target key end

     0   :  { %9 = vsyncpa [#allocation3], 0  ;;  %s846_s0 = inlined_call_operand.hbm [shape: f32[2,8,128], index: 0, kind: input, shape index: {}]   ;;  %s847_s1 = inlined_call_operand.hbm [shape: f32[2,8,128], index: 1, kind: input, shape index: {}]   ;;  %s848_s2 = inlined_call_operand.hbm [shape: f32[2,8,128], index: 2, kind: output, shape index: {0}]   ;;  %s849_s3 = inlined_call_operand.vmem [shape: f32[2,1,1], index: 3, kind: output, shape index: {1}]  }
   0x1   :  { %11 = vsyncpa [#allocation3 + $0x1], 0 }
   0x2   :  { %12 = vsyncpa [#allocation6], 0 }
   0x3   :  { %14 = vsyncpa [#allocation6 + $0x1], 0 }
   0x4   :  { %15 = vsyncpa [#allocation4], 0 }
   0x5   :  { %17 = vsyncpa [#allocation4 + $0x1], 0  ;;  %s708_s12 = smov 0   ;;  %s710_s13 = smov 0  }
   0x6   :  { %s712_s14 = smov 0   ;;  %s714_s15 = smov 0  }
   0x7   :  { %s716_s16 = smov 0   ;;  %s718_s17 = smov 0  }
   0x8 LB: > { %s447_s18 = sadd.s32 4294967295, %s685_s17   ;;  %s448_s19 = sadd.s32 4294967294, %s685_s17   ;;  %s685_s17 = sphi %s718_s17, %s23_s17   ;;  %s681_s16 = sphi %s716_s16, %s858_s16   ;;  %s677_s15 = sphi %s714_s15, %s857_s15   ;;  %s673_s14 = sphi %s712_s14, %s856_s14   ;;  %s669_s13 = sphi %s710_s13, %s855_s13   ;;  %s665_s12 = sphi %s708_s12, %s854_s12  }
   0x9   : > { %s35_s20 = sadd.s32 1, %s681_s16  ;;  %s44_s21 = sadd.s32 1, %s673_s14 }
   0xa   : > { %p37_p0 = scmp.ge.s32.totalorder %s35_s20, 2  ;;  %p51_p1 = scmp.ne.s32.totalorder %s673_s14, %s669_s13 }
   0xb   : > { %p52_p2 = scmp.eq.s32.totalorder %s685_s17, 0  ;;  %p57_p3 = scmp.ne.s32.totalorder %s669_s13, %s665_s12 }
   0xc   : > { %s860_s20 = smov (%p37_p0, %s35_s20), 0  ;;  %p58_p5 = scmp.eq.s32.totalorder %s447_s18, 0 }
   0xd   : > { %p749_p4 = por %p52_p2, %p51_p1  ;;  %s39_s23 = ssub.s32 %s681_s16, %s860_s20 }
   0xe   : > { %p111_p6 = scmp.eq.s32.totalorder %s447_s18, 1  ;;  %p42_p7 = scmp.eq.s32.totalorder %s39_s23, 0 }
   0xf   : > { %p755_p8 = por %p58_p5, %p57_p3  ;;  %p117_p10 = scmp.eq.s32.totalorder %s448_s19, 1 }
  0x10   : > { %p759_p9 = por %p111_p6, %p51_p1  ;;  %p450_p12 = scmp.ge.s32.totalorder %s685_s17, 2 }
  0x11   : > { %s764_s26 = scalar_select %p42_p7, %s673_s14, %s44_s21  }
  0x12   : > { %p766_p11 = por %p117_p10, %p57_p3  ;;  %p484_p13 = scmp.lt.s32.totalorder %s685_s17, 2 }
  0x13   : > { %s163_s28 = sand.u32 1, %s673_s14   ;;  %s452_s30 = sshll.u32 %s681_s16, 3 }
  0x14   : > { %s451_s29 = sshll.u32 %s163_s28, 3  ;;  %s172_s6 = scalar_lea.hbm %s846_s0, %s452_s30 }
  0x15   : > { %s167_s7 = scalar_lea.vmem [#allocation2], %s451_s29  ;;  %s174_s9 = sshll.u32 %s172_s6, 4  ;;  %s175_s9 = int_to_ptr.hbm [resolvable:$true] %s174_s9 }
  0x16   : > { %s176_s8 = sshll.u32 %s167_s7, 4  ;;  %p474_p0 = pnand %p484_p13, %p749_p4  ;;  %s177_s8 = int_to_ptr.vmem [resolvable:$true] %s176_s8 }
  0x17   : > { %p455_p1 = scmp.ge.s32.totalorder %s685_s17, 1  ;;  %p201_p2 = scmp.lt.s32.totalorder %s685_s17, 3 }
  0x18   : > { %s164_s10 = scalar_lea.sflag [#allocation3], %s163_s28  ;;  %s192_s19 = scalar_lea.hbm %s847_s1, %s452_s30 }
  0x19   : > { %476 = dma.hbm_to_vmem [thread:$0]  (!%p474_p0), %s175_s9, 128, %s177_s8, %s164_s10  }
  0x1a   : > { %p202_p3 = pnand %p455_p1, %p201_p2  ;;  %s187_s21 = scalar_lea.vmem [#allocation5], %s451_s29 }
  0x1b   : > { %s196_s23 = sshll.u32 %s187_s21, 4  ;;  %s194_s4 = sshll.u32 %s192_s19, 4  ;;  %s197_s23 = int_to_ptr.vmem [resolvable:$true] %s196_s23  ;;  %s195_s4 = int_to_ptr.hbm [resolvable:$true] %s194_s4 }
  0x1c   : > { %s184_s5 = scalar_lea.sflag [#allocation6], %s163_s28  ;;  %205 = sbr.rel (%p202_p3) target bundleno = 248 (0xf8), region = 28 }
  0x1d   : > { %479 = dma.hbm_to_vmem [thread:$0]  (!%p474_p0), %s195_s4, 128, %s197_s23, %s184_s5  }
  0x1e   : > { %s785_s22 = sand.u32 (!%p202_p3), 1, %s669_s13  }
  0x1f   : > { %s788_s6 = sshll.u32 (!%p202_p3), %s785_s22, 3  ;;  %s208_s7 = scalar_lea.sflag (!%p202_p3), [#allocation3], %s785_s22 }
  0x20   : > { %s211_s8 = scalar_lea.vmem (!%p202_p3), [#allocation2], %s788_s6 }
  0x21   : > { %652 = dma.done.wait (%p755_p8), %s208_s7, 128  }
  0x22   : > { %654 = vsyncadd (%p755_p8), %s208_s7, 4294967168  ;;  %s218_s28 = scalar_lea.sflag [#allocation6], %s785_s22  ;;  %s221_s29 = scalar_lea.vmem [#allocation5], %s788_s6 }
  0x23   : > { %656 = dma.done.wait (%p755_p8), %s218_s28, 128  }
  0x24   : > { %658 = vsyncadd (%p755_p8), %s218_s28, 4294967168  ;;  %v262_v0 = vld [vmem:[%s211_s8] sm:$0xff]  ;;  %v263_v1 = vld [vmem:[%s221_s29] sm:$0xff]  ;;  %s460_s24 = sshll.u32 %s677_s15, 3  ;;  %s247_s11 = scalar_lea.vmem [#allocation7], %s788_s6 }
  0x25   : > { %v264_v2 = vmul.f32 0.8964844, %v262_v0  ;;  %v265_v3 = vmul.f32 0.003515625, %v263_v1  ;;  %s316_s10 = scalar_lea.hbm %s848_s2, %s460_s24  ;;  %s318_s18 = sshll.u32 %s247_s11, 4  ;;  %s319_s18 = int_to_ptr.vmem [resolvable:$true] %s318_s18 }
  0x26   : > { %s320_s19 = sshll.u32 %s316_s10, 4  ;;  %s302_s21 = scalar_lea.sflag [#allocation4], %s785_s22  ;;  %s321_s19 = int_to_ptr.hbm [resolvable:$true] %s320_s19 }
  0x27   : > { %v266_v4 = vadd.f32 %v265_v3, %v264_v2  ;;  %s613_s23 = sshra.s32 %s321_s19, 4  ;;  %s619_s8 = scalar_lea.hbm %s848_s2, 16  ;;  %s614_s23 = int_to_ptr.hbm [resolvable:$true] %s613_s23 }
  0x28   : > { %s615_s4 = scalar_lea.hbm %s614_s23, 8  ;;  %p620_p7 = scmp.lt.s32.totalorder %s614_s23, %s848_s2 }
  0x29   : > { %v267_v5 = vadd.f32 0.05, %v266_v4  ;;  %p616_p4 = scmp.ne.s32.totalorder %s614_s23, %s615_s4  ;;  %p621_p8 = scmp.lt.s32.totalorder %s619_s8, %s615_s4 }
  0x2b   : > { %535 = vlog2.f32 %v267_v5  ;;  %v270_v6 = vsub.f32 1.0, %v267_v5  ;;  %p617_p5 = pnand %p616_p4, %p759_p9  ;;  %p622_p10 = por %p621_p8, %p620_p7 }
  0x2d   : > { %537 = vlog2.f32 %v270_v6  ;;  %p618_p6 = pneg %p617_p5 }
  0x2f   : > { %p623_p13 = pnand %p622_p10, %p618_p6 }
  0x31   : > { %v536_v7 = vpop.eup %535 }
  0x32   : > { %v269_v8 = vmul.f32 0.6931472, %v536_v7 }
  0x33   : > { %v538_v9 = vpop.eup %537 }
  0x34   : > { %275 = vadd.xlane.f32.xlu0 %v269_v8  ;;  %v272_v10 = vmul.f32 0.6931472, %v538_v9 }
  0x36   : > { %v273_v11 = vsub.f32 %v269_v8, %v272_v10 }
  0x38   : > { %274 = vst [vmem:[%s247_s11] sm:$0xff] %v273_v11 }
  0x3c   : > { %284 = vadd.xlane.f32.xlu0 %v272_v10 }
  0x3d   : > { %626 = shalt.err (!%p623_p13)
}
  0x3e   : > { %471 = dma.vmem_to_hbm [thread:$0]  (%p759_p9), %s319_s18, 128, %s321_s19, %s302_s21   ;;  %vm260_vm0 = vcmask 0   ;;  %v687_v26 = vmov 0.0  }
  0x3f   : > { %p253_p0 = scmp.lt.s32.totalorder %s677_s15, 1 }
  0x41   : > { %s862_s15 = smov (!%p253_p0, %s677_s15), 1 }
  0x42   : > { %s255_s6 = scalar_lea.vmem %s849_s3, %s862_s15 }
  0x43   : > { %261 = vst.msk [vmem:[%s255_s6] sm:$0x1] %vm260_vm0, %v687_v26 }
  0x4a   : > { %v296_v27 = vld [vmem:[%s255_s6] sm:$0x1] }
  0xa7   : > { %v276_v12 = vpop.xlane.xlu0 %275 }
  0xa8   : > { %v277_v13 = vrot.slane %v276_v12, 4 }
  0xaa   : > { %v278_v14 = vadd.f32 %v277_v13, %v276_v12 }
  0xac   : > { %v279_v15 = vrot.slane %v278_v14, 2 }
  0xae   : > { %v280_v16 = vadd.f32 %v279_v15, %v278_v14 }
  0xaf   : > { %v285_v17 = vpop.xlane.xlu0 %284 }
  0xb0   : > { %v286_v18 = vrot.slane %v285_v17, 4  ;;  %v281_v19 = vrot.slane %v280_v16, 1 }
  0xb2   : > { %v287_v20 = vadd.f32 %v286_v18, %v285_v17  ;;  %v282_v21 = vadd.f32 %v281_v19, %v280_v16 }
  0xb4   : > { %v288_v22 = vrot.slane %v287_v20, 2  ;;  %463 = vpush %v282_v21 }
  0xb6   : > { %v289_v23 = vadd.f32 %v288_v22, %v287_v20 }
  0xb8   : > { %v290_v24 = vrot.slane %v289_v23, 1 }
  0xba   : > { %v291_v25 = vadd.f32 %v290_v24, %v289_v23 }
  0xbc   : > { %465 = vpush %v291_v25 }
  0xe5   : > { %s464_s24 = spop %463 }
  0xed   : > { %s466_s30 = spop %465 }
  0xee   : > { %s293_s9 = sadd.f32 %s466_s30, %s464_s24 }
  0xf0   : > { %s294_s10 = ssub.f32 0.0, %s293_s9 }
  0xf2   : > { %s295_s11 = sadd.f32 -107.88917, %s294_s10 }
  0xf4   : > { %v297_v28 = vstv %s295_s11 }
  0xf5   : > { %v298_v29 = vadd.f32 %v297_v28, %v296_v27 }
  0xf7   : > { %300 = vst.msk [vmem:[%s255_s6] sm:$0x1] %vm260_vm0, %v298_v29 }
  0xf8 PF: > { %s335_s18 = sand.u32 1, %s665_s12   ;;  %p481_p9 = pnand %p450_p12, %p766_p11 }
  0xf9   : > { %s336_s15 = scalar_lea.sflag [#allocation4], %s335_s18 }
  0xfa   : > { %p482_p1 = pneg %p481_p9 }
  0xfc   : > { %660 = dma.done.wait (%p482_p1), %s336_s15, 128  }
  0xfd   : > { %662 = vsyncadd (%p482_p1), %s336_s15, 4294967168  ;;  %s23_s17 = sadd.s32 1, %s685_s17   ;;  %s854_s12 = smov %s669_s13 }
  0xfe   : > { %p20_p2 = scmp.ge.s32.totalorder %s23_s17, 4   ;;  %s855_s13 = smov %s673_s14 }
  0xff   : > { %s856_s14 = smov %s764_s26  ;;  %s857_s15 = smov %s681_s16 }
 0x100   : > { %s858_s16 = smov %s860_s20  ;;  %22 = sbr.rel (!%p20_p2) target bundleno = 8 (0x8), region = 102 }
 0x105   :  { %348 = vsyncpa [#allocation3], 1 }
 0x106   :  { %350 = vsyncpa [#allocation3 + $0x1], 1 }
 0x107   :  { %351 = vsyncpa [#allocation6], 1 }
 0x108   :  { %353 = vsyncpa [#allocation6 + $0x1], 1 }
 0x109   :  { %354 = vsyncpa [#allocation4], 1 }
 0x10a   :  { %356 = vsyncpa [#allocation4 + $0x1], 1 }

</bundles_post_ra>
